<compile_context>
chip_gen: v7x
topology: tpu7x:2x2x1
jax: 0.10.0
libtpu: 0.0.40
codegen_flags: <defaults>
</compile_context>

<pallas_src>
import jax
import jax.numpy as jnp
from jax.experimental import pallas as pl
from jax.experimental.pallas import tpu as pltpu


_WORKING_SET_BUDGET = 24 << 20   # double-buffered (in + out) bytes per grid step
_MIN_BLOCK_BYTES = 1 << 20       # aim for >= ~1 MiB input blocks (HBM roofline)
_TARGET_GRID_STEPS = 4           # v7x: 2 TensorCores x 2-deep pipeline
_VMEM_LIMIT_BYTES = 48 << 20     # < v7x's 64 MiB physical per TC; safe on v5e/v6e


def _nan_mask_kernel(x_ref, o_ref):
    """Write [nan_to_num(x) | isnan(x)] into one fused (rows, 2D) block."""
    x = x_ref[...]
    d = x.shape[-1]
    isnan = jnp.isnan(x)
    finfo = jnp.finfo(x.dtype)
    # torch.nan_to_num(x, nan=0.0): NaN -> 0, +inf -> dtype max, -inf -> dtype min
    clean = jnp.where(isnan, jnp.zeros_like(x), x)
    clean = jnp.where(x == jnp.inf, jnp.full_like(x, finfo.max), clean)
    clean = jnp.where(x == -jnp.inf, jnp.full_like(x, finfo.min), clean)
    o_ref[:, :d] = clean
    o_ref[:, d:] = isnan.astype(o_ref.dtype)


def _choose_row_tile(rows: int, d: int, itemsize: int) -> int:
    """Byte-based row tile: big enough for HBM roofline, small enough for VMEM."""
    # sublane packing granularity: 8 rows (f32), 16 (bf16), 32 (int8/fp8)
    min_rows = max(8, 32 // max(itemsize, 1))
    if rows <= min_rows:
        return rows                          # single full-extent block
    bytes_per_row = 6 * d * itemsize         # double-buffered: 2 * (D in + 2D out)
    budget_rows = max(min_rows, _WORKING_SET_BUDGET // bytes_per_row)
    bw_rows = max(min_rows, _MIN_BLOCK_BYTES // max(d * itemsize, 1))
    tile = min(budget_rows, max(rows // _TARGET_GRID_STEPS, bw_rows))
    tile = max(min_rows, (tile // min_rows) * min_rows)
    if tile >= rows:
        return rows                          # one block covering everything
    return tile


def nan_mask(x: jax.Array, *, row_tile: int | None = None) -> jax.Array:
    """Pallas implementation of NaNMask.forward for inputs of shape (..., D)."""
    orig_shape = x.shape
    d = orig_shape[-1]
    x2 = x.reshape(-1, d)
    rows = x2.shape[0]
    itemsize = jnp.dtype(x.dtype).itemsize

    if row_tile is None:
        row_tile = _choose_row_tile(rows, d, itemsize)

    grid = (pl.cdiv(rows, row_tile),)        # partial last block handled by Pallas

    out2 = pl.pallas_call(
        _nan_mask_kernel,
        out_shape=jax.ShapeDtypeStruct((rows, 2 * d), x.dtype),
        grid_spec=pl.GridSpec(
            grid=grid,
            in_specs=[pl.BlockSpec((row_tile, d), lambda i: (i, 0))],
            out_specs=pl.BlockSpec((row_tile, 2 * d), lambda i: (i, 0)),
        ),
        compiler_params=pltpu.CompilerParams(
            dimension_semantics=("parallel",),
            vmem_limit_bytes=_VMEM_LIMIT_BYTES,
        ),
    )(x2)

    return out2.reshape(*orig_shape[:-1], 2 * d)


if __name__ == "__main__":
    key = jax.random.PRNGKey(0)

    def reference(x):
        return jnp.concatenate(
            [jnp.nan_to_num(x, nan=0.0), jnp.isnan(x).astype(x.dtype)], axis=-1
        )

    k1, k2, k3, k4 = jax.random.split(key, 4)

    # Case 1: small, non-128-aligned feature dim (D=32) with NaN and +/-inf
    # (exercises the fused in-kernel concat with masked lane stores and the
    #  inf-clamping path).
    B, S, D = 2, 8, 32
    x = jax.random.normal(k1, (B, S, D), dtype=jnp.float32)
    u = jax.random.uniform(k2, (B, S, D))
    x = jnp.where(u < 0.15, jnp.float32(jnp.nan), x)
    x = jnp.where((u >= 0.15) & (u < 0.20), jnp.float32(jnp.inf), x)
    x = jnp.where((u >= 0.20) & (u < 0.25), jnp.float32(-jnp.inf), x)
    out = jax.block_until_ready(nan_mask(x))
    assert out.shape == (B, S, 2 * D)
    assert jnp.array_equal(out, reference(x)), "mismatch vs reference (D=32 path)"

    # Case 2: 128-aligned D with rows (=26) not a multiple of the forced tile
    # (=8) -> exercises the masked partial last block (no pad, no slice).
    B2, S2, D2 = 2, 13, 128
    x2 = jax.random.normal(k3, (B2, S2, D2), dtype=jnp.float32)
    x2 = jnp.where(jax.random.uniform(k4, (B2, S2, D2)) < 0.2, jnp.float32(jnp.nan), x2)
    out2 = jax.block_until_ready(nan_mask(x2, row_tile=8))
    assert out2.shape == (B2, S2, 2 * D2)
    assert jnp.array_equal(out2, reference(x2)), "mismatch vs reference (partial block)"

    # Case 3: same input through the automatic tile chooser (single block).
    out3 = jax.block_until_ready(nan_mask(x2))
    assert jnp.array_equal(out3, reference(x2)), "mismatch vs reference (auto tile)"

    print("KERNEL_OK")
</pallas_src>

<mosaic_0001>
module attributes {stable_mosaic.version = 11 : i64} {
  func.func @_nan_mask_kernel(%arg0: i32, %arg1: memref<16x32xf32, #tpu.memory_space<vmem>>, %arg2: memref<16x64xf32, #tpu.memory_space<vmem>>) attributes {dimension_semantics = [#tpu.dimension_semantics<parallel>], iteration_bounds = array<i64: 1>, scalar_prefetch = 0 : i64, scratch_operands = 0 : i64, tpu.core_type = #tpu.core_type<tc>, window_params = [{transform_indices = @transform_0, window_bounds = array<i64: 16, 32>}, {transform_indices = @transform_1, window_bounds = array<i64: 16, 64>}]} {
    %c0 = arith.constant 0 : index
    %c0_0 = arith.constant 0 : index
    %0 = vector.load %arg1[%c0, %c0_0] : memref<16x32xf32, #tpu.memory_space<vmem>>, vector<16x32xf32>
    %1 = arith.cmpf one, %0, %0 : vector<16x32xf32>
    %cst = arith.constant 0.000000e+00 : f32
    %2 = vector.broadcast %cst : f32 to vector<16x32xf32>
    %3 = arith.select %1, %2, %0 : vector<16x32xi1>, vector<16x32xf32>
    %cst_1 = arith.constant 0x7F800000 : f32
    %4 = vector.broadcast %cst_1 : f32 to vector<16x32xf32>
    %5 = arith.cmpf oeq, %0, %4 : vector<16x32xf32>
    %cst_2 = arith.constant 3.40282347E+38 : f32
    %6 = vector.broadcast %cst_2 : f32 to vector<16x32xf32>
    %7 = arith.select %5, %6, %3 : vector<16x32xi1>, vector<16x32xf32>
    %cst_3 = arith.constant 0xFF800000 : f32
    %8 = vector.broadcast %cst_3 : f32 to vector<16x32xf32>
    %9 = arith.cmpf oeq, %0, %8 : vector<16x32xf32>
    %cst_4 = arith.constant -3.40282347E+38 : f32
    %10 = vector.broadcast %cst_4 : f32 to vector<16x32xf32>
    %11 = arith.select %9, %10, %7 : vector<16x32xi1>, vector<16x32xf32>
    %c0_5 = arith.constant 0 : index
    %c0_6 = arith.constant 0 : index
    %12 = vector.load %arg2[%c0_5, %c0_6] : memref<16x64xf32, #tpu.memory_space<vmem>>, vector<16x32xf32>
    tpu.vector_store %arg2[%c0_5, %c0_6], %11 {strides = array<i32>} : memref<16x64xf32, #tpu.memory_space<vmem>>, vector<16x32xf32>,
    %13 = arith.extui %1 : vector<16x32xi1> to vector<16x32xi32>
    %14 = arith.sitofp %13 : vector<16x32xi32> to vector<16x32xf32>
    %c0_7 = arith.constant 0 : index
    %c32 = arith.constant 32 : index
    %15 = vector.load %arg2[%c0_7, %c32] : memref<16x64xf32, #tpu.memory_space<vmem>>, vector<16x32xf32>
    tpu.vector_store %arg2[%c0_7, %c32], %14 {strides = array<i32>} : memref<16x64xf32, #tpu.memory_space<vmem>>, vector<16x32xf32>,
    return
  }
  func.func @transform_0(%arg0: i32) -> (i32, i32) {
    %c0_i32 = arith.constant 0 : i32
    %c0_i32_0 = arith.constant 0 : i32
    return %arg0, %c0_i32 : i32, i32
  }
  func.func @transform_1(%arg0: i32) -> (i32, i32) {
    %c0_i32 = arith.constant 0 : i32
    %c0_i32_0 = arith.constant 0 : i32
    return %arg0, %c0_i32 : i32, i32
  }
}

</mosaic_0001>

<bundles_post_ra>
// kernel: tpu_custom_call.1
= control target key start
LH: loop header
LB: loop body
LE: loop exit
PB: predicated region body
PF: predicated region fallthrough
CT: control target
= control target key end

     0   :  { %6 = vsyncpa [#allocation3], 0  ;;  %s181_s0 = inlined_call_operand.hbm [shape: f32[16,32], index: 0, kind: input, shape index: {}]   ;;  %s182_s1 = inlined_call_operand.hbm [shape: f32[16,64], index: 1, kind: output, shape index: {}]  }
   0x1   :  { %7 = vsyncpa [#allocation4], 0  ;;  %s133_s6 = smov [#allocation2]   ;;  %s85_s10 = scalar_lea.hbm %s181_s0, 256 }
   0x2   :  { %s13_s7 = sshll.u32 %s133_s6, 4  ;;  %p86_p0 = scmp.ne.s32.totalorder %s181_s0, %s85_s10  ;;  %s14_s7 = int_to_ptr.vmem [resolvable:$true] %s13_s7 }
   0x3   :  { %p89_p1 = scmp.lt.u32.totalorder %s85_s10, %s181_s0 }
   0x5   :  { %p91_p2 = pnand %p89_p1, %p86_p0 }
   0x7   :  { %94 = shalt.err (!%p91_p2)
}
   0x8   :  { %s95_s15 = scalar_lea.vmem %s14_s7, 256  ;;  %p100_p4 = scmp.lt.s32.totalorder %s14_s7, %s14_s7 }
   0x9   :  { %p96_p3 = scmp.ne.s32.totalorder %s14_s7, %s95_s15  ;;  %p101_p5 = scmp.lt.s32.totalorder %s95_s15, %s95_s15 }
   0xb   :  { %p102_p6 = por %p101_p5, %p100_p4 }
   0xd   :  { %p103_p7 = pnand %p102_p6, %p96_p3 }
   0xf   :  { %106 = shalt.err (!%p103_p7)
}
  0x10   :  { %s134_s16 = smov 128   ;;  %s135_s17 = smov 8  }
  0x11   :  { %19 = dma.hbm_to_vmem [thread:$0]  %s181_s0, 256, %s14_s7, [#allocation3], %s134_s16, %s134_s16, %s135_s17  }
  0x12   :  { %129 = dma.done.wait [#allocation3], 256  }
  0x13   :  { %130 = vsyncadd [#allocation3], 4294967040  ;;  %v23_v0 = vld [vmem:[#allocation2] sm:$0xff]  ;;  %v24_v1 = vld [vmem:[#allocation2 + $0x8] sm:$0xff]  ;;  %vm37_vm0 = vcmask 261120   ;;  %v136_v3 = vmov 0.0  }
  0x14   :  { %vm25_vm1 = vcmp.ne.f32.partialorder %v23_v0, %v23_v0  ;;  %vm26_vm2 = vcmp.ne.f32.partialorder %v24_v1, %v24_v1  ;;  %vm29_vm3 = vcmp.eq.f32.partialorder %v23_v0, inf  ;;  %vm30_vm4 = vcmp.eq.f32.partialorder %v24_v1, inf  ;;  %s137_s0 = smov 32   ;;  %s138_s20 = smov [#allocation5]  }
  0x15   :  { %v28_v2 = vsel %vm26_vm2, 0.0, %v24_v1  ;;  %vm33_vm5 = vcmp.eq.f32.partialorder %v23_v0, -inf  ;;  %vm34_vm6 = vcmp.eq.f32.partialorder %v24_v1, -inf  ;;  %v72_v4 = vsel %vm25_vm1, 1.0, %v136_v3  ;;  %s60_s21 = sshll.u32 %s138_s20, 4  ;;  %s61_s21 = int_to_ptr.vmem [resolvable:$true] %s60_s21 }
  0x16   :  { %v32_v5 = vsel %vm30_vm4, 3.4028235e+38, %v28_v2  ;;  %v73_v6 = vsel %vm26_vm2, 1.0, %v136_v3  ;;  %v27_v7 = vsel %vm25_vm1, 0.0, %v23_v0  ;;  %vm52_vm7 = vcmask 523520   ;;  %s107_s22 = scalar_lea.vmem %s61_s21, 256  ;;  %p112_p9 = scmp.lt.s32.totalorder %s61_s21, %s61_s21 }
  0x17   :  { %v36_v8 = vsel %vm34_vm6, -3.4028235e+38, %v32_v5  ;;  %v80_v9 = vpack.i.bf16 %v73_v6, %v72_v4  ;;  %v31_v10 = vsel %vm29_vm3, 3.4028235e+38, %v27_v7  ;;  %p108_p8 = scmp.ne.s32.totalorder %s61_s21, %s107_s22  ;;  %p113_p10 = scmp.lt.s32.totalorder %s107_s22, %s107_s22 }
  0x18   :  { %v35_v11 = vsel %vm33_vm5, -3.4028235e+38, %v31_v10  ;;  %39 = vst.msk [vmem:[#allocation5 + $0x8] sm:$0xff] %vm37_vm0, %v36_v8 }
  0x19   :  { %81 = vrot.lane.b32.xlu0 %v80_v9, %s137_s0  ;;  %38 = vst.msk [vmem:[#allocation5] sm:$0xff] %vm37_vm0, %v35_v11  ;;  %p114_p11 = por %p113_p10, %p112_p9 }
  0x1b   :  { %p115_p12 = pnand %p114_p11, %p108_p8 }
  0x8b   :  { %v82_v12 = vpop.permute.xlu0 %81 }
  0x8c   :  { %v84_v13 = vunpack.i.h.bf16 %v82_v12  ;;  %v83_v14 = vunpack.i.l.bf16 %v82_v12 }
  0x8e   :  { %53 = vst.msk [vmem:[#allocation5] sm:$0xff] %vm52_vm7, %v83_v14  ;;  %54 = vst.msk [vmem:[#allocation5 + $0x8] sm:$0xff] %vm52_vm7, %v84_v13 }
  0x8f   :  { %118 = shalt.err (!%p115_p12)
}
  0x90   :  { %s119_s25 = scalar_lea.hbm %s182_s1, 256 }
  0x91   :  { %p120_p13 = scmp.ne.s32.totalorder %s182_s1, %s119_s25  ;;  %p123_p0 = scmp.lt.u32.totalorder %s119_s25, %s182_s1 }
  0x93   :  { %p125_p1 = pnand %p123_p0, %p120_p13 }
  0x95   :  { %128 = shalt.err (!%p125_p1)
}
  0x96   :  { %66 = dma.vmem_to_hbm [thread:$0]  %s61_s21, 256, %s182_s1, [#allocation4], %s134_s16, %s134_s16, %s135_s17  }
  0x97   :  { %131 = dma.done.wait [#allocation4], 256  }
  0x98   :  { %132 = vsyncadd [#allocation4], 4294967040 }
  0x99   :  { %70 = vsyncpa [#allocation3], 1 }
  0x9a   :  { %71 = vsyncpa [#allocation4], 1 }

</bundles_post_ra>
